<compile_context>
chip_gen: v5e
topology: v5e:2x2
jax: 0.10.0
libtpu: 0.0.40
codegen_flags: <defaults>
</compile_context>

<pallas_src>
import jax
import jax.numpy as jnp
from jax.experimental import pallas as pl
from jax.experimental.pallas import tpu as pltpu

BN_EPS = 1e-5


# --------------------------------------------------------------------------- #
# Generation detection / per-generation tuning knobs
# --------------------------------------------------------------------------- #
def _tpu_generation():
    try:
        kind = jax.devices()[0].device_kind.lower()
    except Exception:
        return "unknown"
    if "v5 lite" in kind or "v5e" in kind or "v5lite" in kind:
        return "v5e"
    if "v6" in kind:
        return "v6e"
    if "v7" in kind or "tpu7" in kind or "7x" in kind:
        return "v7x"
    if "v4" in kind:
        return "v4"
    if "v5" in kind:
        return "v5p"
    return "unknown"


def _gen_params(gen):
    """min_m: MXU row-fill target for the flattened matmul M = B*tc.
    block_budget: live bytes allowed per grid step (block + f32 temporaries).
    bf16_mxu: feed the MXU bf16 operands when inputs are f32.
    vmem_cap: ceiling for vmem_limit_bytes.  two_core: need >= 2 grid steps."""
    if gen == "v7x":
        return dict(min_m=256, block_budget=7 << 20, bf16_mxu=True,
                    vmem_cap=48 << 20, two_core=True)
    if gen == "v6e":
        return dict(min_m=256, block_budget=14 << 20, bf16_mxu=True,
                    vmem_cap=96 << 20, two_core=False)
    if gen in ("v5e", "v5p", "v4"):
        return dict(min_m=128, block_budget=14 << 20, bf16_mxu=False,
                    vmem_cap=96 << 20, two_core=False)
    # Unknown / future: conservative v7x-like assumptions.
    return dict(min_m=256, block_budget=7 << 20, bf16_mxu=True,
                vmem_cap=48 << 20, two_core=True)


# --------------------------------------------------------------------------- #
# Kernel
# --------------------------------------------------------------------------- #
def _make_kernel(gate_in_io_dtype):
    def context_gating_kernel(x_ref, w_ref, b_ref, gamma_ref, beta_ref, o_ref):
        B, Tc, D = x_ref.shape
        x = x_ref[...]                                    # (B, Tc, D), native dtype

        # ---- Linear: one flattened MXU matmul, operands in w_ref.dtype ------
        # (bf16 fast path on v6e/v7x), f32 accumulation.
        x_mx = x.astype(w_ref.dtype)
        x1 = jnp.dot(x_mx.reshape(B * Tc, D), w_ref[...],
                     preferred_element_type=jnp.float32)            # (B*Tc, D)
        x1 = (x1 + b_ref[...].astype(jnp.float32)).reshape(B, Tc, D)

        # ---- BatchNorm1d(C), training mode: two-pass per-channel stats ------
        # mean / biased var over (B, D) per channel; two-pass for robustness.
        inv_n = 1.0 / float(B * D)
        mean = jnp.sum(x1, axis=2, keepdims=True).sum(axis=0, keepdims=True) * inv_n
        xc = x1 - mean                                               # (B, Tc, D)
        var = jnp.sum(xc * xc, axis=2, keepdims=True).sum(axis=0, keepdims=True) * inv_n

        gamma = gamma_ref[...].astype(jnp.float32).reshape(1, Tc, 1)
        beta = beta_ref[...].astype(jnp.float32).reshape(1, Tc, 1)
        scale = gamma * jax.lax.rsqrt(var + BN_EPS)
        x1n = xc * scale + beta

        # ---- GLU(cat([x, x1], -1)) == x * sigmoid(x1) ------------------------
        gate = jax.nn.sigmoid(x1n)                                   # f32
        if gate_in_io_dtype:
            # bf16 I/O on bf16-VALU chips: packed-vreg epilogue.
            o_ref[...] = (x * gate.astype(x.dtype)).astype(o_ref.dtype)
        else:
            o_ref[...] = (x.astype(jnp.float32) * gate).astype(o_ref.dtype)

    return context_gating_kernel


# --------------------------------------------------------------------------- #
# Tile picker
# --------------------------------------------------------------------------- #
def _pick_channel_tile(B, C, D, x_dtype, gen_p):
    itemsize = jnp.dtype(x_dtype).itemsize
    # Dtype-aware sublane alignment for the second-minor block dim.
    align = {4: 8, 2: 16, 1: 32}.get(itemsize, 8)
    if C % align != 0:
        align = 8
    if C % align != 0:
        return C  # block dim must then equal the full array dim

    # Live bytes per tile channel inside one grid step:
    #   x block + out block (native dtype) + ~4 f32 temporaries of the same
    #   block footprint (x_mx/x_f32, x1, centered copy, gate).
    per_channel = B * D * (2 * itemsize + 4 * 4)

    # MXU row-fill target: flattened matmul M = B*tc >= min_m (round up first).
    tc = max(align, -(-gen_p["min_m"] // B))
    tc = -(-tc // align) * align

    # VMEM cap on the live block.
    tc_cap = max(align, (gen_p["block_budget"] // per_channel) // align * align)
    tc = min(tc, tc_cap, C)

    # v7x: leave at least two grid steps so both TensorCores get work.
    if gen_p["two_core"] and C >= 2 * align:
        tc = min(tc, max(align, (C // 2) // align * align))

    tc = max(align, tc - tc % align)
    while C % tc != 0:
        tc -= align
    return tc


# --------------------------------------------------------------------------- #
# Wrapper
# --------------------------------------------------------------------------- #
def context_gating(x, w, b, gamma, beta, *, tc=None, mxu_dtype=None):
    """x: (B, C, D); w: (D_in, D_out) = Linear.weight.T; b: (D,);
    gamma/beta: (C,)  -> returns (B, C, D)."""
    B, C, D = x.shape
    assert w.shape == (D, D) and b.shape == (D,)
    assert gamma.shape == (C,) and beta.shape == (C,)

    gen = _tpu_generation()
    gp = _gen_params(gen)

    # MXU operand dtype: bf16 fast path on v6e/v7x for f32 inputs; otherwise
    # keep the input dtype.  Weight is pre-cast once in the wrapper so the
    # resident VMEM copy is already narrow.
    if mxu_dtype is None:
        mxu_dtype = (jnp.bfloat16
                     if (gp["bf16_mxu"] and x.dtype == jnp.float32)
                     else x.dtype)
    w_mx = w.astype(mxu_dtype)

    if tc is None:
        tc = _pick_channel_tile(B, C, D, x.dtype, gp)
    assert C % tc == 0 and (tc % 8 == 0 or tc == C), (C, tc)

    grid = (C // tc,)
    itemsize = x.dtype.itemsize

    # Explicit VMEM footprint estimate (double-buffered x/out blocks, resident
    # weight double-buffer, in-kernel f32 temporaries) -> scoped VMEM limit.
    block_bytes = 2 * (2 * B * tc * D * itemsize)          # x + out, 2 buffers
    w_bytes = 2 * D * D * w_mx.dtype.itemsize              # resident weight
    temp_bytes = 4 * B * tc * D * 4                        # f32 temporaries
    est = block_bytes + w_bytes + temp_bytes + (2 << 20)
    vmem_limit = int(min(max(est, 32 << 20), gp["vmem_cap"]))

    cost = pl.CostEstimate(
        flops=2 * B * C * D * D + 10 * B * C * D,
        transcendentals=B * C * D,                          # sigmoid
        bytes_accessed=(2 * B * C * D * itemsize
                        + D * D * w_mx.dtype.itemsize
                        + D * 4 + 2 * C * 4),
    )

    kernel = _make_kernel(
        gate_in_io_dtype=(x.dtype == jnp.bfloat16 and gen in ("v6e", "v7x")))

    return pl.pallas_call(
        kernel,
        out_shape=jax.ShapeDtypeStruct((B, C, D), x.dtype),
        grid=grid,
        in_specs=[
            pl.BlockSpec((B, tc, D), lambda c: (0, c, 0)),   # x: channel tile
            pl.BlockSpec((D, D), lambda c: (0, 0)),          # weight: resident
            pl.BlockSpec((1, D), lambda c: (0, 0)),          # bias: resident
            pl.BlockSpec((tc, 1), lambda c: (c, 0)),         # gamma tile
            pl.BlockSpec((tc, 1), lambda c: (c, 0)),         # beta tile
        ],
        out_specs=pl.BlockSpec((B, tc, D), lambda c: (0, c, 0)),
        compiler_params=pltpu.CompilerParams(
            dimension_semantics=("parallel",),
            vmem_limit_bytes=vmem_limit),
        cost_estimate=cost,
    )(x, w_mx, b.reshape(1, D), gamma.reshape(C, 1), beta.reshape(C, 1))


def context_gating_ref(x, w, b, gamma, beta):
    """Pure-JAX reference matching the PyTorch forward (training-mode BN)."""
    x32 = x.astype(jnp.float32)
    x1 = jnp.einsum('bcd,de->bce', x32, w.astype(jnp.float32)) + b.astype(jnp.float32)
    mean = jnp.mean(x1, axis=(0, 2), keepdims=True)
    var = jnp.mean((x1 - mean) ** 2, axis=(0, 2), keepdims=True)
    x1 = (x1 - mean) / jnp.sqrt(var + BN_EPS)
    x1 = x1 * gamma.reshape(1, -1, 1) + beta.reshape(1, -1, 1)
    return (x32 * jax.nn.sigmoid(x1)).astype(x.dtype)


if __name__ == "__main__":
    B, C, D = 2, 64, 128   # batch=2, channels=64, dimension=128

    key = jax.random.PRNGKey(0)
    kx, kw, kb, kg, kbt = jax.random.split(key, 5)

    x = jax.random.normal(kx, (B, C, D), dtype=jnp.float32)
    # nn.Linear(D, D): weight (D, D), y = x @ W.T + b.  Pass W.T directly.
    w_t = jax.random.normal(kw, (D, D), dtype=jnp.float32) * (1.0 / jnp.sqrt(D))
    bias = jax.random.normal(kb, (D,), dtype=jnp.float32) * 0.1
    gamma = 1.0 + 0.1 * jax.random.normal(kg, (C,), dtype=jnp.float32)
    beta = 0.1 * jax.random.normal(kbt, (C,), dtype=jnp.float32)

    ref = context_gating_ref(x, w_t, bias, gamma, beta)

    # 1) Strict-precision path (forced f32 MXU operands) with an explicit small
    #    channel tile to exercise the multi-step grid + resident weight spec.
    out_f32 = jax.block_until_ready(
        context_gating(x, w_t, bias, gamma, beta, tc=16, mxu_dtype=jnp.float32))
    assert out_f32.shape == (B, C, D)
    assert jnp.allclose(out_f32, ref, atol=1e-4, rtol=1e-4), "f32-path mismatch"

    # 2) Default perf path (auto tile picker; bf16 MXU operands on v6e/v7x).
    out = jax.block_until_ready(context_gating(x, w_t, bias, gamma, beta))
    gp = _gen_params(_tpu_generation())
    tol = 5e-2 if (gp["bf16_mxu"] and x.dtype == jnp.float32) else 1e-4
    assert out.shape == (B, C, D)
    assert jnp.allclose(out, ref, atol=tol, rtol=tol), "perf-path mismatch"

    print("KERNEL_OK")
</pallas_src>

<mosaic_0001>
module attributes {stable_mosaic.version = 11 : i64} {
  func.func @context_gating_kernel(%arg0: i32, %arg1: memref<2x16x128xf32, #tpu.memory_space<vmem>>, %arg2: memref<128x128xf32, #tpu.memory_space<vmem>>, %arg3: memref<1x128xf32, #tpu.memory_space<vmem>>, %arg4: memref<16x1xf32, #tpu.memory_space<vmem>>, %arg5: memref<16x1xf32, #tpu.memory_space<vmem>>, %arg6: memref<2x16x128xf32, #tpu.memory_space<vmem>>) attributes {dimension_semantics = [#tpu.dimension_semantics<parallel>], iteration_bounds = array<i64: 4>, scalar_prefetch = 0 : i64, scratch_operands = 0 : i64, tpu.core_type = #tpu.core_type<tc>, window_params = [{transform_indices = @transform_0, window_bounds = array<i64: 2, 16, 128>}, {pipeline_mode = #tpu.pipeline_mode<synchronous>, transform_indices = @transform_1, window_bounds = array<i64: 128, 128>}, {pipeline_mode = #tpu.pipeline_mode<synchronous>, transform_indices = @transform_2, window_bounds = array<i64: 1, 128>}, {transform_indices = @transform_3, window_bounds = array<i64: 16, 1>}, {transform_indices = @transform_4, window_bounds = array<i64: 16, 1>}, {transform_indices = @transform_5, window_bounds = array<i64: 2, 16, 128>}]} {
    %c0 = arith.constant 0 : index
    %c0_0 = arith.constant 0 : index
    %c0_1 = arith.constant 0 : index
    %0 = vector.load %arg1[%c0, %c0_0, %c0_1] : memref<2x16x128xf32, #tpu.memory_space<vmem>>, vector<2x16x128xf32>
    %1 = vector.shape_cast %0 : vector<2x16x128xf32> to vector<32x128xf32>
    %c0_2 = arith.constant 0 : index
    %c0_3 = arith.constant 0 : index
    %2 = vector.load %arg2[%c0_2, %c0_3] : memref<128x128xf32, #tpu.memory_space<vmem>>, vector<128x128xf32>
    %cst = arith.constant dense<0.000000e+00> : vector<32x128xf32>
    %3 = tpu.matmul %1, %2, %cst {dimension_numbers = #tpu.dot_dimension_numbers<[1], [0], [0], [1], [0, 0, 1, 1], [], []>} : vector<32x128xf32>, vector<128x128xf32>, vector<32x128xf32> -> vector<32x128xf32>
    %c0_4 = arith.constant 0 : index
    %c0_5 = arith.constant 0 : index
    %4 = vector.load %arg3[%c0_4, %c0_5] : memref<1x128xf32, #tpu.memory_space<vmem>>, vector<1x128xf32>
    %5 = vector.broadcast %4 : vector<1x128xf32> to vector<32x128xf32>
    %6 = arith.addf %3, %5 : vector<32x128xf32>
    %7 = vector.shape_cast %6 : vector<32x128xf32> to vector<2x16x128xf32>
    %cst_6 = arith.constant dense<0.000000e+00> : vector<2x16xf32>
    %8 = vector.multi_reduction <add>, %7, %cst_6 [2] : vector<2x16x128xf32> to vector<2x16xf32>
    %9 = vector.shape_cast %8 : vector<2x16xf32> to vector<2x16x1xf32>
    %cst_7 = arith.constant dense<0.000000e+00> : vector<16x1xf32>
    %10 = vector.multi_reduction <add>, %9, %cst_7 [0] : vector<2x16x1xf32> to vector<16x1xf32>
    %11 = vector.shape_cast %10 : vector<16x1xf32> to vector<1x16x1xf32>
    %cst_8 = arith.constant 3.906250e-03 : f32
    %12 = vector.broadcast %cst_8 : f32 to vector<1x16x1xf32>
    %13 = arith.mulf %11, %12 : vector<1x16x1xf32>
    %14 = vector.broadcast %13 : vector<1x16x1xf32> to vector<2x16x128xf32>
    %15 = arith.subf %7, %14 : vector<2x16x128xf32>
    %16 = arith.mulf %15, %15 : vector<2x16x128xf32>
    %cst_9 = arith.constant dense<0.000000e+00> : vector<2x16xf32>
    %17 = vector.multi_reduction <add>, %16, %cst_9 [2] : vector<2x16x128xf32> to vector<2x16xf32>
    %18 = vector.shape_cast %17 : vector<2x16xf32> to vector<2x16x1xf32>
    %cst_10 = arith.constant dense<0.000000e+00> : vector<16x1xf32>
    %19 = vector.multi_reduction <add>, %18, %cst_10 [0] : vector<2x16x1xf32> to vector<16x1xf32>
    %20 = vector.shape_cast %19 : vector<16x1xf32> to vector<1x16x1xf32>
    %cst_11 = arith.constant 3.906250e-03 : f32
    %21 = vector.broadcast %cst_11 : f32 to vector<1x16x1xf32>
    %22 = arith.mulf %20, %21 : vector<1x16x1xf32>
    %c0_12 = arith.constant 0 : index
    %c0_13 = arith.constant 0 : index
    %23 = vector.load %arg4[%c0_12, %c0_13] : memref<16x1xf32, #tpu.memory_space<vmem>>, vector<16x1xf32>
    %24 = vector.shape_cast %23 : vector<16x1xf32> to vector<1x16x1xf32>
    %c0_14 = arith.constant 0 : index
    %c0_15 = arith.constant 0 : index
    %25 = vector.load %arg5[%c0_14, %c0_15] : memref<16x1xf32, #tpu.memory_space<vmem>>, vector<16x1xf32>
    %26 = vector.shape_cast %25 : vector<16x1xf32> to vector<1x16x1xf32>
    %cst_16 = arith.constant 9.99999974E-6 : f32
    %27 = vector.broadcast %cst_16 : f32 to vector<1x16x1xf32>
    %28 = arith.addf %22, %27 : vector<1x16x1xf32>
    %29 = math.rsqrt %28 : vector<1x16x1xf32>
    %30 = arith.mulf %24, %29 : vector<1x16x1xf32>
    %31 = vector.broadcast %30 : vector<1x16x1xf32> to vector<2x16x128xf32>
    %32 = arith.mulf %15, %31 : vector<2x16x128xf32>
    %33 = vector.broadcast %26 : vector<1x16x1xf32> to vector<2x16x128xf32>
    %34 = arith.addf %32, %33 : vector<2x16x128xf32>
    %35 = arith.negf %34 : vector<2x16x128xf32>
    %36 = math.exp %35 : vector<2x16x128xf32>
    %cst_17 = arith.constant 1.000000e+00 : f32
    %37 = vector.broadcast %cst_17 : f32 to vector<2x16x128xf32>
    %38 = arith.addf %37, %36 : vector<2x16x128xf32>
    %39 = arith.divf %37, %38 : vector<2x16x128xf32>
    %40 = arith.mulf %0, %39 : vector<2x16x128xf32>
    %c0_18 = arith.constant 0 : index
    %c0_19 = arith.constant 0 : index
    %c0_20 = arith.constant 0 : index
    %41 = vector.load %arg6[%c0_18, %c0_19, %c0_20] : memref<2x16x128xf32, #tpu.memory_space<vmem>>, vector<2x16x128xf32>
    tpu.vector_store %arg6[%c0_18, %c0_19, %c0_20], %40 {strides = array<i32>} : memref<2x16x128xf32, #tpu.memory_space<vmem>>, vector<2x16x128xf32>,
    return
  }
  func.func @transform_0(%arg0: i32) -> (i32, i32, i32) {
    %c0_i32 = arith.constant 0 : i32
    %c0_i32_0 = arith.constant 0 : i32
    %c0_i32_1 = arith.constant 0 : i32
    return %c0_i32, %arg0, %c0_i32_0 : i32, i32, i32
  }
  func.func @transform_1(%arg0: i32) -> (i32, i32) {
    %c0_i32 = arith.constant 0 : i32
    %c0_i32_0 = arith.constant 0 : i32
    %c0_i32_1 = arith.constant 0 : i32
    return %c0_i32, %c0_i32_0 : i32, i32
  }
  func.func @transform_2(%arg0: i32) -> (i32, i32) {
    %c0_i32 = arith.constant 0 : i32
    %c0_i32_0 = arith.constant 0 : i32
    %c0_i32_1 = arith.constant 0 : i32
    return %c0_i32, %c0_i32_0 : i32, i32
  }
  func.func @transform_3(%arg0: i32) -> (i32, i32) {
    %c0_i32 = arith.constant 0 : i32
    %c0_i32_0 = arith.constant 0 : i32
    return %arg0, %c0_i32 : i32, i32
  }
  func.func @transform_4(%arg0: i32) -> (i32, i32) {
    %c0_i32 = arith.constant 0 : i32
    %c0_i32_0 = arith.constant 0 : i32
    return %arg0, %c0_i32 : i32, i32
  }
  func.func @transform_5(%arg0: i32) -> (i32, i32, i32) {
    %c0_i32 = arith.constant 0 : i32
    %c0_i32_0 = arith.constant 0 : i32
    %c0_i32_1 = arith.constant 0 : i32
    return %c0_i32, %arg0, %c0_i32_0 : i32, i32, i32
  }
}

</mosaic_0001>

<bundles_post_ra>
// kernel: tpu_custom_call.1
= control target key start
LH: loop header
LB: loop body
LE: loop exit
PB: predicated region body
PF: predicated region fallthrough
CT: control target
= control target key end

     0   :  { %10 = vsyncpa [#allocation4], 0  ;;  %s1163_s0 = inlined_call_operand.vmem [shape: f32[2,64,128], index: 0, kind: input, shape index: {}]   ;;  %s1164_s1 = inlined_call_operand.hbm [shape: f32[128,128], index: 1, kind: input, shape index: {}]   ;;  %s1165_s2 = inlined_call_operand.vmem [shape: f32[1,128], index: 2, kind: input, shape index: {}]   ;;  %s1166_s3 = inlined_call_operand.vmem [shape: f32[64,1], index: 3, kind: input, shape index: {}]   ;;  %s1167_s4 = inlined_call_operand.vmem [shape: f32[64,1], index: 4, kind: input, shape index: {}]   ;;  %s1168_s5 = inlined_call_operand.hbm [shape: f32[2,64,128], index: 5, kind: output, shape index: {}]  }
   0x1   :  { %11 = vsyncpa [#allocation5], 0 }
   0x2   :  { %13 = vsyncpa [#allocation5 + $0x1], 0  ;;  %s977_s18 = smov 0   ;;  %s979_s19 = smov 0  }
   0x3   :  { %s981_s20 = smov 0   ;;  %s983_s21 = smov 0  }
   0x4 LB: > { %s998_s22 = sadd.s32 4294967295, %s934_s21   ;;  %s702_s23 = sadd.s32 4294967294, %s934_s21   ;;  %s934_s21 = sphi %s983_s21, %s1176_s21   ;;  %s930_s20 = sphi %s981_s20, %s1175_s20   ;;  %s926_s19 = sphi %s979_s19, %s1174_s19   ;;  %s922_s18 = sphi %s977_s18, %s1173_s18  }
   0x5   : > { %s1002_s24 = sadd.s32 1, %s934_s21   ;;  %s26_s25 = sadd.s32 1, %s930_s20 }
   0x6   : > { %s23_s26 = ssub.s32 %s934_s21, %s1002_s24  ;;  %p33_p0 = scmp.ne.s32.totalorder %s930_s20, %s926_s19 }
   0x7   : > { %p24_p1 = scmp.eq.s32.totalorder %s23_s26, 0  ;;  %p34_p2 = scmp.eq.s32.totalorder %s934_s21, 0 }
   0x8   : > { %p157_p3 = scmp.eq.s32.totalorder %s998_s22, 3  ;;  %p162_p4 = scmp.ne.s32.totalorder %s926_s19, %s922_s18 }
   0x9   : > { %s1014_s27 = scalar_select %p24_p1, %s930_s20, %s26_s25  }
   0xa   : > { %p1016_p5 = por %p34_p2, %p33_p0  ;;  %p1020_p6 = por %p157_p3, %p33_p0 }
   0xb   : > { %p163_p7 = scmp.eq.s32.totalorder %s702_s23, 3  ;;  %p703_p8 = scmp.ge.s32.totalorder %s934_s21, 1 }
   0xc   : > { %p170_p9 = scmp.lt.s32.totalorder %s934_s21, 5  ;;  %p796_p11 = scmp.eq.s32.totalorder %s998_s22, 0 }
   0xd   : > { %p1026_p10 = por %p163_p7, %p162_p4  ;;  %s181_s9 = sshll.u32 %s1164_s1, 4  ;;  %s182_s9 = int_to_ptr.hbm [resolvable:$true] %s181_s9 }
   0xe   : > { %p1031_p12 = pnand %p703_p8, %p170_p9  ;;  %s936_s10 = smov [#allocation3]  }
   0xf   : > { %s183_s11 = sshll.u32 %s936_s10, 4  ;;  %s937_s12 = smov 128   ;;  %s184_s11 = int_to_ptr.vmem [resolvable:$true] %s183_s11 }
  0x10   : > { %p788_p13 = pneg %p1031_p12  ;;  %s938_s13 = smov 8  }
  0x11   : > { %p705_p1 = scmp.ge.s32.totalorder %s934_s21, 4 }
  0x12   : > { %p789_p0 = pnand %p796_p11, %p788_p13 }
  0x13   : > { %196 = sbr.rel (%p705_p1) target bundleno = 32 (0x20), region = 24 }
  0x14   : > { %791 = dma.hbm_to_vmem [thread:$0]  (!%p789_p0), %s182_s9, 2048, %s184_s11, [#allocation4], %s937_s12, %s937_s12, %s938_s13  }
  0x18   : > { %199 = sbr.rel (!%p1016_p5) target bundleno = 32 (0x20), region = 28  ;;  %s201_s14 = sand.u32 (%p1016_p5), 1, %s930_s20  }
  0x19   : > { %s726_s15 = sshll.u32 (%p1016_p5), %s934_s21, 4  ;;  %s706_s16 = sshll.u32 (%p1016_p5), %s201_s14, 5 }
  0x1a   : > { %s206_s25 = scalar_lea.vmem (%p1016_p5), %s1163_s0, %s726_s15  ;;  %s203_s26 = scalar_lea.vmem (%p1016_p5), [#allocation2], %s706_s16 }
  0x1b   : > { %v241_v0 = vld [vmem:[%s206_s25] sm:$0xff] (%p1016_p5)  ;;  %v243_v1 = vld [vmem:[%s206_s25 + $0x8] sm:$0xff] (%p1016_p5) }
  0x1c   : > { %v245_v2 = vld [vmem:[%s206_s25 + $0x40] sm:$0xff] (%p1016_p5)  ;;  %242 = vst [vmem:[%s203_s26] sm:$0xff] (%p1016_p5), %v241_v0  ;;  %v247_v3 = vld [vmem:[%s206_s25 + $0x48] sm:$0xff] (%p1016_p5) }
  0x1d   : > { %244 = vst [vmem:[%s203_s26 + $0x8] sm:$0xff] %v243_v1 }
  0x1e   : > { %246 = vst [vmem:[%s203_s26 + $0x10] sm:$0xff] %v245_v2 }
  0x1f   : > { %248 = vst [vmem:[%s203_s26 + $0x18] sm:$0xff] %v247_v3 }
  0x20 PF: > { %275 = sbr.rel (%p1031_p12) target bundleno = 639 (0x27f), region = 74  ;;  %s278_s28 = sand.u32 (!%p1031_p12), 1, %s926_s19  }
  0x21   : > { %s1055_s7 = sshll.u32 (!%p1031_p12), %s278_s28, 5 }
  0x22   : > { %s1058_s8 = scalar_lea.vmem (!%p1031_p12), [#allocation2], %s1055_s7 }
  0x25   : > { %913 = dma.done.wait (%p796_p11), [#allocation4], 2048  }
  0x26   : > { %915 = vsyncadd (%p796_p11), [#allocation4], 4294965248  ;;  %v353_v4 = vld [vmem:[#allocation3 + $0x78] sm:$0xff]  ;;  %v352_v5 = vld [vmem:[#allocation3 + $0x70] sm:$0xff]  ;;  %s713_s10 = sshll.u32 %s998_s22, 1  ;;  %v939_v49 = vmov 0  }
  0x27   : > { %729 = vmatpush.msra.mxu2 %v353_v4  ;;  %358 = vmatpush.msra.mxu0 %v353_v4  ;;  %v351_v6 = vld [vmem:[#allocation3 + $0x68] sm:$0xff]  ;;  %v350_v7 = vld [vmem:[#allocation3 + $0x60] sm:$0xff]  ;;  %v349_v8 = vld [vmem:[#allocation3 + $0x58] sm:$0xff]  ;;  %p322_p2 = scmp.lt.s32.totalorder %s713_s10, 7  ;;  %s1117_s23 = scalar_lea.vmem [#allocation6], %s1055_s7 }
  0x28   : > { %730 = vmatpush.msra.mxu3 %v353_v4  ;;  %728 = vmatpush.msra.mxu1 %v353_v4  ;;  %v348_v9 = vld [vmem:[#allocation3 + $0x50] sm:$0xff]  ;;  %v347_v10 = vld [vmem:[#allocation3 + $0x48] sm:$0xff]  ;;  %v346_v11 = vld [vmem:[#allocation3 + $0x40] sm:$0xff]  ;;  %s560_s25 = scalar_lea.sflag [#allocation5], %s278_s28 }
  0x29   : > { %732 = vmatpush.msra.mxu2 %v352_v5  ;;  %359 = vmatpush.msra.mxu0 %v352_v5  ;;  %v345_v12 = vld [vmem:[#allocation3 + $0x38] sm:$0xff]  ;;  %v344_v13 = vld [vmem:[#allocation3 + $0x30] sm:$0xff]  ;;  %v343_v14 = vld [vmem:[#allocation3 + $0x28] sm:$0xff]  ;;  %s1178_s10 = smov (!%p322_p2, %s713_s10), 7 }
  0x2a   : > { %733 = vmatpush.msra.mxu3 %v352_v5  ;;  %731 = vmatpush.msra.mxu1 %v352_v5  ;;  %v342_v15 = vld [vmem:[#allocation3 + $0x20] sm:$0xff]  ;;  %v341_v16 = vld [vmem:[#allocation3 + $0x18] sm:$0xff]  ;;  %v340_v17 = vld [vmem:[#allocation3 + $0x10] sm:$0xff]  ;;  %s714_s11 = sshll.u32 %s1178_s10, 3 }
  0x2b   : > { %735 = vmatpush.msra.mxu2 %v351_v6  ;;  %360 = vmatpush.msra.mxu0 %v351_v6  ;;  %v339_v18 = vld [vmem:[#allocation3 + $0x8] sm:$0xff]  ;;  %v338_v19 = vld [vmem:[#allocation3] sm:$0xff]  ;;  %v1065_v20 = vld [vmem:[%s1058_s8 + $0x10] sm:$0xff]  ;;  %s1103_s14 = scalar_lea.vmem %s1167_s4, %s714_s11  ;;  %s325_s17 = scalar_lea.vmem %s1166_s3, %s714_s11 }
  0x2c   : > { %736 = vmatpush.msra.mxu3 %v351_v6  ;;  %734 = vmatpush.msra.mxu1 %v351_v6  ;;  %v1068_v21 = vld [vmem:[%s1058_s8] sm:$0xff]  ;;  %v1071_v22 = vld [vmem:[%s1058_s8 + $0x18] sm:$0xff]  ;;  %v1074_v23 = vld [vmem:[%s1058_s8 + $0x8] sm:$0xff] }
  0x2d   : > { %738 = vmatpush.msra.mxu2 %v350_v7  ;;  %361 = vmatpush.msra.mxu0 %v350_v7  ;;  %v845_v24 = vld [vmem:[%s1165_s2] ss:$0 sm:$0xff] }
  0x2e   : > { %739 = vmatpush.msra.mxu3 %v350_v7  ;;  %737 = vmatpush.msra.mxu1 %v350_v7  ;;  %v421_v50 = vld [vmem:[%s1103_s14] sm:$0xff] }
  0x2f   : > { %741 = vmatpush.msra.mxu2 %v349_v8  ;;  %362 = vmatpush.msra.mxu0 %v349_v8  ;;  %v419_v4 = vld [vmem:[%s325_s17] sm:$0xff] }
  0x30   : > { %742 = vmatpush.msra.mxu3 %v349_v8  ;;  %740 = vmatpush.msra.mxu1 %v349_v8 }
  0x31   : > { %744 = vmatpush.msra.mxu2 %v348_v9  ;;  %363 = vmatpush.msra.mxu0 %v348_v9 }
  0x32   : > { %745 = vmatpush.msra.mxu3 %v348_v9  ;;  %743 = vmatpush.msra.mxu1 %v348_v9 }
  0x33   : > { %747 = vmatpush.msra.mxu2 %v347_v10  ;;  %364 = vmatpush.msra.mxu0 %v347_v10 }
  0x34   : > { %748 = vmatpush.msra.mxu3 %v347_v10  ;;  %746 = vmatpush.msra.mxu1 %v347_v10 }
  0x35   : > { %750 = vmatpush.msra.mxu2 %v346_v11  ;;  %365 = vmatpush.msra.mxu0 %v346_v11 }
  0x36   : > { %751 = vmatpush.msra.mxu3 %v346_v11  ;;  %749 = vmatpush.msra.mxu1 %v346_v11  ;;  %v420_v11 = vld [vmem:[%s325_s17 + $0x8] sm:$0xff] }
  0x37   : > { %753 = vmatpush.msra.mxu2 %v345_v12  ;;  %366 = vmatpush.msra.mxu0 %v345_v12 }
  0x38   : > { %754 = vmatpush.msra.mxu3 %v345_v12  ;;  %752 = vmatpush.msra.mxu1 %v345_v12 }
  0x39   : > { %756 = vmatpush.msra.mxu2 %v344_v13  ;;  %367 = vmatpush.msra.mxu0 %v344_v13 }
  0x3a   : > { %757 = vmatpush.msra.mxu3 %v344_v13  ;;  %755 = vmatpush.msra.mxu1 %v344_v13 }
  0x3b   : > { %759 = vmatpush.msra.mxu2 %v343_v14  ;;  %368 = vmatpush.msra.mxu0 %v343_v14 }
  0x3c   : > { %760 = vmatpush.msra.mxu3 %v343_v14  ;;  %758 = vmatpush.msra.mxu1 %v343_v14  ;;  %v422_v14 = vld [vmem:[%s1103_s14 + $0x8] sm:$0xff] }
  0x3d   : > { %762 = vmatpush.msra.mxu2 %v342_v15  ;;  %369 = vmatpush.msra.mxu0 %v342_v15 }
  0x3e   : > { %763 = vmatpush.msra.mxu3 %v342_v15  ;;  %761 = vmatpush.msra.mxu1 %v342_v15 }
  0x3f   : > { %765 = vmatpush.msra.mxu2 %v341_v16  ;;  %370 = vmatpush.msra.mxu0 %v341_v16 }
  0x40   : > { %766 = vmatpush.msra.mxu3 %v341_v16  ;;  %764 = vmatpush.msra.mxu1 %v341_v16 }
  0x41   : > { %768 = vmatpush.msra.mxu2 %v340_v17  ;;  %371 = vmatpush.msra.mxu0 %v340_v17 }
  0x42   : > { %769 = vmatpush.msra.mxu3 %v340_v17  ;;  %767 = vmatpush.msra.mxu1 %v340_v17 }
  0x43   : > { %771 = vmatpush.msra.mxu2 %v339_v18  ;;  %372 = vmatpush.msra.mxu0 %v339_v18 }
  0x44   : > { %772 = vmatpush.msra.mxu3 %v339_v18  ;;  %770 = vmatpush.msra.mxu1 %v339_v18 }
  0x45   : > { %774 = vmatpush.msra.mxu2 %v338_v19  ;;  %373 = vmatpush.msra.mxu0 %v338_v19 }
  0x46   : > { %380 = vmatmul.f32.vlgmr.msra.gmra.mxu2 %v1065_v20  ;;  %374 = vmatmul.f32.vlgmr.msra.gmra.mxu0 %v1068_v21 }
  0x47   : > { %775 = vmatpush.msra.mxu3 %v338_v19  ;;  %773 = vmatpush.msra.mxu1 %v338_v19 }
  0x48   : > { %383 = vmatmul.f32.vlgmr.msra.gmra.mxu3 %v1071_v22  ;;  %377 = vmatmul.f32.vlgmr.msra.gmra.mxu1 %v1074_v23 }
  0x49   : > { %844 = vset.pattern.permute.xlu1 %v939_v49  ;;  %842 = vset.pattern.permute.xlu2 %v939_v49 }
  0x4a   : > { %843 = vset.pattern.permute.xlu0 %v939_v49 }
  0xc3   : > { %v375_v25 = vpop.f32.mrf.mxu0 }
  0xc4   : > { %v376_v26 = vadd.f32 %v845_v24, %v375_v25 }
  0xc5   : > { %v378_v27 = vpop.f32.mrf.mxu1 }
  0xc6   : > { %387 = vadd.xlane.f32.xlu0 %v376_v26  ;;  %v379_v30 = vadd.f32 %v845_v24, %v378_v27 }
  0xc9   : > { %v381_v28 = vpop.f32.mrf.mxu2 }
  0xca   : > { %v382_v29 = vadd.f32 %v845_v24, %v381_v28 }
  0xcb   : > { %v384_v31 = vpop.f32.mrf.mxu3 }
  0xcc   : > { %391 = vadd.xlane.f32.xlu1 %v382_v29  ;;  %v385_v32 = vadd.f32 %v845_v24, %v384_v31 }
  0xce   : > { %389 = vadd.xlane.f32.xlu0 %v379_v30 }
  0xd4   : > { %393 = vadd.xlane.f32.xlu1 %v385_v32 }
 0x139   : > { %v388_v33 = vpop.xlane.xlu0 %387 }
 0x13f   : > { %v392_v34 = vpop.xlane.xlu1 %391 }
 0x140   : > { %v395_v35 = vadd.f32 %v392_v34, %v388_v33 }
 0x141   : > { %v390_v39 = vpop.xlane.xlu0 %389 }
 0x142   : > { %v397_v36 = vmul.f32 0.00390625, %v395_v35 }
 0x144   : > { %v1083_v37 = vsub.f32 %v382_v29, %v397_v36  ;;  %v1085_v38 = vsub.f32 %v376_v26, %v397_v36 }
 0x146   : > { %v405_v40 = vmul.f32 %v1083_v37, %v1083_v37  ;;  %v403_v41 = vmul.f32 %v1085_v38, %v1085_v38 }
 0x147   : > { %v394_v42 = vpop.xlane.xlu1 %393 }
 0x148   : > { %v396_v43 = vadd.f32 %v394_v42, %v390_v39  ;;  %411 = vadd.xlane.f32.xlu0 %v405_v40  ;;  %407 = vadd.xlane.f32.xlu2 %v403_v41 }
 0x14a   : > { %v398_v44 = vmul.f32 0.00390625, %v396_v43 }
 0x14c   : > { %v1091_v45 = vsub.f32 %v379_v30, %v398_v44  ;;  %v1093_v46 = vsub.f32 %v385_v32, %v398_v44 }
 0x14e   : > { %v406_v47 = vmul.f32 %v1093_v46, %v1093_v46  ;;  %v404_v48 = vmul.f32 %v1091_v45, %v1091_v45 }
 0x150   : > { %413 = vadd.xlane.f32.xlu1 %v406_v47  ;;  %409 = vadd.xlane.f32.xlu2 %v404_v48 }
 0x169   : > { %463 = vperm.xlu1 %844, %v421_v50  }
 0x1bb   : > { %v408_v51 = vpop.xlane.xlu2 %407  ;;  %v412_v52 = vpop.xlane.xlu0 %411 }
 0x1bc   : > { %v415_v53 = vadd.f32 %v412_v52, %v408_v51 }
 0x1be   : > { %v417_v54 = vmul.f32 0.00390625, %v415_v53 }
 0x1c0   : > { %v423_v55 = vadd.f32 1e-05, %v417_v54 }
 0x1c2   : > { %846 = vrsqrt.f32 %v423_v55  ;;  %vm431_vm1 = vweird.f32 %v423_v55 }
 0x1c3   : > { %v414_v56 = vpop.xlane.xlu1 %413  ;;  %v410_v57 = vpop.xlane.xlu2 %409 }
 0x1c4   : > { %v416_v58 = vadd.f32 %v414_v56, %v410_v57 }
 0x1c6   : > { %v418_v59 = vmul.f32 0.00390625, %v416_v58 }
 0x1c8   : > { %v847_v60 = vpop.eup %846  ;;  %v424_v61 = vadd.f32 1e-05, %v418_v59 }
 0x1c9   : > { %v426_v62 = vmul.f32 %v847_v60, %v423_v55  ;;  %vm432_vm0 = vweird.f32 %v847_v60 }
 0x1ca   : > { %848 = vrsqrt.f32 %v424_v61  ;;  %vm433_vm2 = vmor %vm431_vm1, %vm432_vm0  ;;  %vm441_vm4 = vweird.f32 %v424_v61 }
 0x1cb   : > { %v427_v63 = vmul.f32 %v847_v60, %v426_v62 }
 0x1cd   : > { %v428_v0 = vmul.f32 0.5, %v427_v63 }
 0x1cf   : > { %v429_v1 = vsub.f32 1.5, %v428_v0 }
 0x1d0   : > { %v849_v2 = vpop.eup %848 }
 0x1d1   : > { %v436_v3 = vmul.f32 %v849_v2, %v424_v61  ;;  %v430_v5 = vmul.f32 %v847_v60, %v429_v1  ;;  %vm442_vm3 = vweird.f32 %v849_v2 }
 0x1d2   : > { %vm443_vm5 = vmor %vm441_vm4, %vm442_vm3 }
 0x1d3   : > { %v437_v6 = vmul.f32 %v849_v2, %v436_v3  ;;  %v434_v7 = vsel %vm433_vm2, %v847_v60, %v430_v5 }
 0x1d4   : > { %v445_v8 = vmul.f32 %v434_v7, %v419_v4 }
 0x1d5   : > { %v438_v9 = vmul.f32 0.5, %v437_v6 }
 0x1d6   : > { %449 = vperm.xlu2 %842, %v445_v8  }
 0x1d7   : > { %v439_v10 = vsub.f32 1.5, %v438_v9 }
 0x1d9   : > { %v440_v12 = vmul.f32 %v849_v2, %v439_v10 }
 0x1db   : > { %v444_v13 = vsel %vm443_vm5, %v849_v2, %v440_v12  ;;  %v464_v17 = vpop.permute.xlu1 %463 }
 0x1dc   : > { %v446_v15 = vmul.f32 %v444_v13, %v420_v11 }
 0x1de   : > { %454 = vperm.xlu0 %843, %v446_v15   ;;  %468 = vperm.xlu2 %842, %v422_v14  }
 0x230   : > { %v450_v16 = vpop.permute.xlu2 %449 }
 0x231   : > { %v457_v18 = vmul.f32 %v450_v16, %v1085_v38  ;;  %v459_v19 = vmul.f32 %v450_v16, %v1083_v37 }
 0x233   : > { %v471_v24 = vadd.f32 %v464_v17, %v457_v18  ;;  %v473_v25 = vadd.f32 %v464_v17, %v459_v19 }
 0x235   : > { %v717_v26 = vmul.f32 -1.442695, %v471_v24  ;;  %v719_v27 = vmul.f32 -1.442695, %v473_v25 }
 0x237   : > { %850 = vpow2.f32 %v717_v26 }
 0x238   : > { %852 = vpow2.f32 %v719_v27  ;;  %v469_v59 = vpop.permute.xlu2 %468 }
 0x23d   : > { %v851_v28 = vpop.eup %850 }
 0x23e   : > { %v853_v29 = vpop.eup %852  ;;  %v487_v30 = vadd.f32 1.0, %v851_v28 }
 0x23f   : > { %v489_v31 = vadd.f32 1.0, %v853_v29 }
 0x240   : > { %854 = vrcp.f32 %v487_v30  ;;  %v502_v38 = vand.u32 2147483648, %v487_v30  ;;  %v500_v40 = vand.u32 2147483647, %v487_v30  ;;  %vm496_vm8 = vweird.f32 %v487_v30 }
 0x241   : > { %856 = vrcp.f32 %v489_v31  ;;  %v532_v41 = vand.u32 2147483648, %v489_v31  ;;  %v530_v43 = vand.u32 2147483647, %v489_v31  ;;  %vm526_vm10 = vweird.f32 %v489_v31 }
 0x242   : > { %v503_v47 = vor.u32 1.1754944e-38, %v502_v38  ;;  %vm501_vm11 = vcmp.eq.f32.partialorder %v500_v40, 8.507059e+37 }
 0x243   : > { %v533_v50 = vor.u32 1.1754944e-38, %v532_v41  ;;  %vm531_vm13 = vcmp.eq.f32.partialorder %v530_v43, 8.507059e+37 }
 0x246   : > { %v855_v32 = vpop.eup %854 }
 0x247   : > { %v857_v33 = vpop.eup %856  ;;  %v492_v34 = vmul.f32 %v855_v32, %v487_v30  ;;  %vm497_vm6 = vweird.f32 %v855_v32 }
 0x248   : > { %v522_v35 = vmul.f32 %v857_v33, %v489_v31  ;;  %vm527_vm7 = vweird.f32 %v857_v33  ;;  %vm498_vm9 = vmor %vm496_vm8, %vm497_vm6 }
 0x249   : > { %v493_v36 = vsub.f32 1.0, %v492_v34  ;;  %vm528_vm12 = vmor %vm526_vm10, %vm527_vm7 }
 0x24a   : > { %v523_v39 = vsub.f32 1.0, %v522_v35 }
 0x24b   : > { %v494_v37 = vmul.f32 %v855_v32, %v493_v36 }
 0x24c   : > { %v524_v42 = vmul.f32 %v857_v33, %v523_v39 }
 0x24d   : > { %v495_v44 = vadd.f32 %v855_v32, %v494_v37 }
 0x24e   : > { %v525_v48 = vadd.f32 %v857_v33, %v524_v42 }
 0x24f   : > { %v499_v49 = vsel %vm498_vm9, %v855_v32, %v495_v44 }
 0x250   : > { %v504_v51 = vsel %vm501_vm11, %v503_v47, %v499_v49  ;;  %v529_v52 = vsel %vm528_vm12, %v857_v33, %v525_v48  ;;  %v455_v53 = vpop.permute.xlu0 %454 }
 0x251   : > { %v534_v54 = vsel %vm531_vm13, %v533_v50, %v529_v52  ;;  %v551_v55 = vmul.f32 %v504_v51, %v1068_v21  ;;  %v458_v56 = vmul.f32 %v455_v53, %v1091_v45  ;;  %v460_v57 = vmul.f32 %v455_v53, %v1093_v46 }
 0x252   : > { %v553_v58 = vmul.f32 %v534_v54, %v1065_v20 }
 0x253   : > { %555 = vst [vmem:[%s1117_s23] sm:$0xff] %v551_v55  ;;  %v472_v60 = vadd.f32 %v469_v59, %v458_v56  ;;  %v474_v61 = vadd.f32 %v469_v59, %v460_v57 }
 0x254   : > { %557 = vst [vmem:[%s1117_s23 + $0x10] sm:$0xff] %v553_v58 }
 0x255   : > { %v718_v62 = vmul.f32 -1.442695, %v472_v60  ;;  %v720_v63 = vmul.f32 -1.442695, %v474_v61 }
 0x257   : > { %858 = vpow2.f32 %v718_v62 }
 0x258   : > { %860 = vpow2.f32 %v720_v63 }
 0x25d   : > { %v859_v21 = vpop.eup %858 }
 0x25e   : > { %v861_v0 = vpop.eup %860  ;;  %v488_v45 = vadd.f32 1.0, %v859_v21 }
 0x25f   : > { %v490_v1 = vadd.f32 1.0, %v861_v0 }
 0x260   : > { %862 = vrcp.f32 %v488_v45  ;;  %v517_v5 = vand.u32 2147483648, %v488_v45  ;;  %v515_v8 = vand.u32 2147483647, %v488_v45  ;;  %vm511_vm0 = vweird.f32 %v488_v45 }
 0x261   : > { %864 = vrcp.f32 %v490_v1  ;;  %v547_v9 = vand.u32 2147483648, %v490_v1  ;;  %v545_v11 = vand.u32 2147483647, %v490_v1  ;;  %vm541_vm2 = vweird.f32 %v490_v1 }
 0x262   : > { %v518_v13 = vor.u32 1.1754944e-38, %v517_v5  ;;  %vm516_vm3 = vcmp.eq.f32.partialorder %v515_v8, 8.507059e+37 }
 0x263   : > { %v548_v16 = vor.u32 1.1754944e-38, %v547_v9  ;;  %vm546_vm5 = vcmp.eq.f32.partialorder %v545_v11, 8.507059e+37 }
 0x266   : > { %v863_v20 = vpop.eup %862 }
 0x267   : > { %v865_v46 = vpop.eup %864  ;;  %v507_v2 = vmul.f32 %v863_v20, %v488_v45  ;;  %vm512_vm14 = vweird.f32 %v863_v20 }
 0x268   : > { %v537_v3 = vmul.f32 %v865_v46, %v490_v1  ;;  %vm542_vm15 = vweird.f32 %v865_v46  ;;  %vm513_vm1 = vmor %vm511_vm0, %vm512_vm14 }
 0x269   : > { %v508_v4 = vsub.f32 1.0, %v507_v2  ;;  %vm543_vm4 = vmor %vm541_vm2, %vm542_vm15 }
 0x26a   : > { %v538_v6 = vsub.f32 1.0, %v537_v3 }
 0x26b   : > { %v509_v7 = vmul.f32 %v863_v20, %v508_v4 }
 0x26c   : > { %v539_v10 = vmul.f32 %v865_v46, %v538_v6 }
 0x26d   : > { %v510_v12 = vadd.f32 %v863_v20, %v509_v7 }
 0x26e   : > { %v540_v14 = vadd.f32 %v865_v46, %v539_v10 }
 0x26f   : > { %v514_v15 = vsel %vm513_vm1, %v863_v20, %v510_v12 }
 0x270   : > { %v519_v17 = vsel %vm516_vm3, %v518_v13, %v514_v15  ;;  %v544_v18 = vsel %vm543_vm4, %v865_v46, %v540_v14 }
 0x271   : > { %v549_v19 = vsel %vm546_vm5, %v548_v16, %v544_v18  ;;  %v552_v24 = vmul.f32 %v519_v17, %v1074_v23 }
 0x272   : > { %v554_v25 = vmul.f32 %v549_v19, %v1071_v22 }
 0x273   : > { %556 = vst [vmem:[%s1117_s23 + $0x8] sm:$0xff] %v552_v24 }
 0x274   : > { %558 = vst [vmem:[%s1117_s23 + $0x18] sm:$0xff] %v554_v25 }
 0x275   : > { %s727_s26 = sshll.u32 %s998_s22, 4  ;;  %s582_s7 = sshll.u32 %s1117_s23, 4  ;;  %s583_s7 = int_to_ptr.vmem [resolvable:$true] %s582_s7 }
 0x276   : > { %s571_s9 = scalar_lea.hbm %s1168_s5, %s727_s26  ;;  %s940_s11 = smov 256  }
 0x277   : > { %s584_s10 = sshll.u32 %s571_s9, 4  ;;  %780 = sst [smem:[#allocation8]] (%p1020_p6), %s940_s11  ;;  %s585_s10 = int_to_ptr.hbm [resolvable:$true] %s584_s10 }
 0x278   : > { %s941_s28 = smov 1024   ;;  %s942_s12 = smov 2  }
 0x279   : > { %781 = sst [smem:[#allocation8 + $0x1]] (%p1020_p6), %s941_s28  ;;  %s943_s22 = smov 128  }
 0x27a   : > { %782 = sst [smem:[#allocation8 + $0x2]] (%p1020_p6), %s942_s12  ;;  %s944_s13 = smov 8  }
 0x27b   : > { %783 = sst [smem:[#allocation8 + $0x3]] (%p1020_p6), %s943_s22  ;;  %s945_s14 = smov [#allocation7]  }
 0x27c   : > { %784 = sst [smem:[#allocation8 + $0x4]] (%p1020_p6), %s943_s22  ;;  %s946_s15 = smov 0  }
 0x27d   : > { %785 = sst [smem:[#allocation8 + $0x5]] (%p1020_p6), %s944_s13 }
 0x27e   : > { %786 = dma.general (%p1020_p6), %s583_s7, 512, %s585_s10, %s560_s25, %s945_s14, [#allocation8], %s946_s15, 0  }
 0x27f PF: > { %p798_p3 = scmp.ge.s32.totalorder %s934_s21, 2  ;;  %s612_s16 = sand.u32 1, %s922_s18  }
 0x280   : > { %s613_s17 = scalar_lea.sflag [#allocation5], %s612_s16 }
 0x281   : > { %p793_p4 = pnand %p798_p3, %p1026_p10 }
 0x283   : > { %p794_p5 = pneg %p793_p4 }
 0x285   : > { %917 = dma.done.wait (%p794_p5), %s613_s17, 512  }
 0x286   : > { %919 = vsyncadd (%p794_p5), %s613_s17, 4294966784  ;;  %p16_p7 = scmp.ge.s32.totalorder %s1002_s24, 6   ;;  %s1173_s18 = smov %s926_s19 }
 0x287   : > { %s1174_s19 = smov %s930_s20  ;;  %s1175_s20 = smov %s1014_s27 }
 0x288   : > { %s1176_s21 = smov %s1002_s24  ;;  %18 = sbr.rel (!%p16_p7) target bundleno = 4 (0x4), region = 134 }
 0x28d   :  { %619 = vsyncpa [#allocation4], 1 }
 0x28e   :  { %621 = vsyncpa [#allocation4 + $0x1], 1 }
 0x28f   :  { %622 = vsyncpa [#allocation5], 1 }
 0x290   :  { %624 = vsyncpa [#allocation5 + $0x1], 1 }

</bundles_post_ra>
